<compile_context>
chip_gen: v7x
topology: tpu7x:2x2x1
jax: 0.10.0
libtpu: 0.0.40
codegen_flags: <defaults>
</compile_context>

<pallas_src>
import math
import jax
import jax.numpy as jnp
from jax.experimental import pallas as pl
from jax.experimental.pallas import tpu as pltpu


def attention_kernel(hid_ref, enc_ref, mask_ref, wt_ref, bias_ref, vcol_ref,
                     p_ref, m2_ref, m1_ref, out_ref):
    H = hid_ref.shape[1]
    # Hidden half of the fused Linear: ONE (B, H) @ (H, H) matmul for all batches.
    hid_terms = jnp.dot(hid_ref[...], wt_ref[pl.ds(0, H), :],
                        preferred_element_type=jnp.float32)              # (B, H)
    # Replicate per-batch rows into the interleaved (S*B, H) row order on the
    # MXU (row j of enc_flat belongs to batch j % B); avoids in-kernel reshapes.
    hid_rep = jnp.dot(p_ref[...], hid_terms,
                      preferred_element_type=jnp.float32)                # (S*B, H)
    # Encoder half: ONE fused (S*B, H) @ (H, H) matmul for all batches/positions.
    enc_terms = jnp.dot(enc_ref[...], wt_ref[pl.ds(H, H), :],
                        preferred_element_type=jnp.float32)              # (S*B, H)
    energy = jnp.maximum(enc_terms + hid_rep + bias_ref[...], 0.0)       # (S*B, H)
    # v-contraction on the MXU instead of a VPU mul + XLU lane reduce.
    t = jnp.dot(energy, vcol_ref[...],
                preferred_element_type=jnp.float32)                      # (S*B, 1)
    # De-interleave the score column into a lane-dense (B, S) tile:
    #   scores[b, s] = t[s*B + b]   (M1 / M2 are 0/1 selection constants).
    scores = jnp.dot(m1_ref[...], t * m2_ref[...],
                     preferred_element_type=jnp.float32)                 # (B, S)
    scores = jnp.where(mask_ref[...] != 0, scores, -jnp.inf)
    # Softmax along the lane (S) axis.
    m = jnp.max(scores, axis=1, keepdims=True)                           # (B, 1)
    e = jnp.exp(scores - m)
    denom = jnp.sum(e, axis=1, keepdims=True)                            # (B, 1)
    # NOTE: a fully-masked row gives NaN (denom == 0), matching PyTorch's
    # masked_fill(-inf) + softmax behaviour exactly.
    out_ref[...] = e * pl.reciprocal(denom, approx=False)                # (B, S)


def prepare_attention_params(W, bias, v, src_len, batch):
    """One-time (per-shape) preparation of kernel constants (hoisted out of the
    per-call path). W: (H, 2H), bias: (H,), v: (H,)."""
    H = W.shape[0]
    SB = src_len * batch
    wt = jnp.asarray(W, jnp.float32).T                         # (2H, H): rows :H hidden, H: encoder
    bias_row = jnp.asarray(bias, jnp.float32).reshape(1, H)    # (1, H)
    v_col = jnp.asarray(v, jnp.float32).reshape(H, 1)          # (H, 1)
    rows = jnp.arange(SB)
    # P[j, b]  = 1 iff j % B == b   (replicates hidden rows into s-major order)
    P = (rows[:, None] % batch == jnp.arange(batch)[None, :]).astype(jnp.float32)    # (S*B, B)
    # M2[j, s] = 1 iff j // B == s  (scatters flat score j to sequence slot s)
    M2 = (rows[:, None] // batch == jnp.arange(src_len)[None, :]).astype(jnp.float32)  # (S*B, S)
    # M1[b, j] = 1 iff j % B == b   (gathers per-batch rows)
    M1 = P.T                                                   # (B, S*B)
    return wt, bias_row, v_col, P, M2, M1


@jax.jit
def attention_forward(hidden, encoder_outputs, src_mask, params):
    """hidden (1,B,H), encoder_outputs (S,B,H), src_mask (S,B) bool -> (B,1,S)."""
    wt, bias_row, v_col, P, M2, M1 = params
    S, B, H = encoder_outputs.shape
    SB = S * B
    hid = hidden.reshape(B, H)                 # free: drop unit leading dim
    enc_flat = encoder_outputs.reshape(SB, H)  # free row-major collapse; row j = (s=j//B, b=j%B)
    mask_bs = src_mask.T.astype(jnp.int32)     # (B, S): tiny, matches score orientation

    out_bs = pl.pallas_call(
        attention_kernel,
        out_shape=jax.ShapeDtypeStruct((B, S), jnp.float32),
        grid=(1,),
        in_specs=[
            pl.BlockSpec((B, H), lambda i: (0, 0)),          # hid
            pl.BlockSpec((SB, H), lambda i: (0, 0)),         # enc_flat
            pl.BlockSpec((B, S), lambda i: (0, 0)),          # mask (B, S) int32
            pl.BlockSpec((2 * H, H), lambda i: (0, 0)),      # W^T
            pl.BlockSpec((1, H), lambda i: (0, 0)),          # bias row
            pl.BlockSpec((H, 1), lambda i: (0, 0)),          # v column
            pl.BlockSpec((SB, B), lambda i: (0, 0)),         # P
            pl.BlockSpec((SB, S), lambda i: (0, 0)),         # M2
            pl.BlockSpec((B, SB), lambda i: (0, 0)),         # M1
        ],
        out_specs=pl.BlockSpec((B, S), lambda i: (0, 0)),
        compiler_params=pltpu.CompilerParams(
            dimension_semantics=("arbitrary",)),
    )(hid, enc_flat, mask_bs, wt, bias_row, v_col, P, M2, M1)

    # (B, S) -> (B, 1, S): unit-dim reshape, no data movement.
    return out_bs[:, None, :]


def attention_reference(hidden, encoder_outputs, src_mask, W, bias, v):
    """Pure-JAX reference mirroring the PyTorch forward."""
    S, B, H = encoder_outputs.shape
    h = jnp.transpose(jnp.broadcast_to(hidden, (S, B, H)), (1, 0, 2))    # (B,S,H)
    enc = jnp.transpose(encoder_outputs, (1, 0, 2))                      # (B,S,H)
    cat = jnp.concatenate([h, enc], axis=2)                              # (B,S,2H)
    energy = jax.nn.relu(cat @ W.T + bias)                               # (B,S,H)
    scores = jnp.einsum("bsh,h->bs", energy, v)                          # (B,S)
    scores = jnp.where(src_mask.T, scores, -jnp.inf)
    return jax.nn.softmax(scores, axis=1)[:, None, :]                    # (B,1,S)


if __name__ == "__main__":
    B, S, H = 2, 8, 32

    key = jax.random.PRNGKey(0)
    k_hid, k_enc, k_w, k_b, k_v = jax.random.split(key, 5)

    hidden = jax.random.normal(k_hid, (1, B, H), dtype=jnp.float32)
    encoder_outputs = jax.random.normal(k_enc, (S, B, H), dtype=jnp.float32)

    # valid lengths per batch: batch 0 fully valid, batch 1 has 5 valid positions
    lengths = jnp.array([S, 5], dtype=jnp.int32)
    src_mask = (jnp.arange(S)[:, None] < lengths[None, :])               # (S, B) bool

    # nn.Linear(2H, H): weight (H, 2H), bias (H,), uniform(-1/sqrt(2H), 1/sqrt(2H))
    std_w = 1.0 / math.sqrt(2 * H)
    W = jax.random.uniform(k_w, (H, 2 * H), jnp.float32, -std_w, std_w)
    bias = jax.random.uniform(k_b, (H,), jnp.float32, -std_w, std_w)
    # self.v: uniform(-1/sqrt(H), 1/sqrt(H))
    std_v = 1.0 / math.sqrt(H)
    v = jax.random.uniform(k_v, (H,), jnp.float32, -std_v, std_v)

    # Prepared once, outside the per-call path (review pt. 7).
    params = prepare_attention_params(W, bias, v, S, B)

    out = attention_forward(hidden, encoder_outputs, src_mask, params)
    out = jax.block_until_ready(out)

    ref = attention_reference(hidden, encoder_outputs, src_mask, W, bias, v)
    assert out.shape == (B, 1, S), out.shape
    assert jnp.allclose(out, ref, atol=1e-5, rtol=1e-5), (out, ref)

    print("KERNEL_OK")
</pallas_src>

<mosaic_0001>
module attributes {stable_mosaic.version = 11 : i64} {
  func.func @attention_kernel(%arg0: i32, %arg1: memref<2x32xf32, #tpu.memory_space<vmem>>, %arg2: memref<16x32xf32, #tpu.memory_space<vmem>>, %arg3: memref<2x8xi32, #tpu.memory_space<vmem>>, %arg4: memref<64x32xf32, #tpu.memory_space<vmem>>, %arg5: memref<1x32xf32, #tpu.memory_space<vmem>>, %arg6: memref<32x1xf32, #tpu.memory_space<vmem>>, %arg7: memref<16x2xf32, #tpu.memory_space<vmem>>, %arg8: memref<16x8xf32, #tpu.memory_space<vmem>>, %arg9: memref<2x16xf32, #tpu.memory_space<vmem>>, %arg10: memref<2x8xf32, #tpu.memory_space<vmem>>) attributes {dimension_semantics = [#tpu.dimension_semantics<arbitrary>], iteration_bounds = array<i64: 1>, scalar_prefetch = 0 : i64, scratch_operands = 0 : i64, tpu.core_type = #tpu.core_type<tc>, window_params = [{pipeline_mode = #tpu.pipeline_mode<synchronous>, transform_indices = @transform_0, window_bounds = array<i64: 2, 32>}, {pipeline_mode = #tpu.pipeline_mode<synchronous>, transform_indices = @transform_1, window_bounds = array<i64: 16, 32>}, {pipeline_mode = #tpu.pipeline_mode<synchronous>, transform_indices = @transform_2, window_bounds = array<i64: 2, 8>}, {pipeline_mode = #tpu.pipeline_mode<synchronous>, transform_indices = @transform_3, window_bounds = array<i64: 64, 32>}, {pipeline_mode = #tpu.pipeline_mode<synchronous>, transform_indices = @transform_4, window_bounds = array<i64: 1, 32>}, {pipeline_mode = #tpu.pipeline_mode<synchronous>, transform_indices = @transform_5, window_bounds = array<i64: 32, 1>}, {pipeline_mode = #tpu.pipeline_mode<synchronous>, transform_indices = @transform_6, window_bounds = array<i64: 16, 2>}, {pipeline_mode = #tpu.pipeline_mode<synchronous>, transform_indices = @transform_7, window_bounds = array<i64: 16, 8>}, {pipeline_mode = #tpu.pipeline_mode<synchronous>, transform_indices = @transform_8, window_bounds = array<i64: 2, 16>}, {pipeline_mode = #tpu.pipeline_mode<synchronous>, transform_indices = @transform_9, window_bounds = array<i64: 2, 8>}]} {
    %c0 = arith.constant 0 : index
    %c0_0 = arith.constant 0 : index
    %0 = vector.load %arg1[%c0, %c0_0] : memref<2x32xf32, #tpu.memory_space<vmem>>, vector<2x32xf32>
    %c0_1 = arith.constant 0 : index
    %c0_2 = arith.constant 0 : index
    %1 = vector.load %arg4[%c0_1, %c0_2] : memref<64x32xf32, #tpu.memory_space<vmem>>, vector<32x32xf32>
    %cst = arith.constant dense<0.000000e+00> : vector<2x32xf32>
    %2 = tpu.matmul %0, %1, %cst {dimension_numbers = #tpu.dot_dimension_numbers<[1], [0], [0], [1], [0, 0, 1, 1], [], []>} : vector<2x32xf32>, vector<32x32xf32>, vector<2x32xf32> -> vector<2x32xf32>
    %c0_3 = arith.constant 0 : index
    %c0_4 = arith.constant 0 : index
    %3 = vector.load %arg7[%c0_3, %c0_4] : memref<16x2xf32, #tpu.memory_space<vmem>>, vector<16x2xf32>
    %cst_5 = arith.constant dense<0.000000e+00> : vector<16x32xf32>
    %4 = tpu.matmul %3, %2, %cst_5 {dimension_numbers = #tpu.dot_dimension_numbers<[1], [0], [0], [1], [0, 0, 1, 1], [], []>} : vector<16x2xf32>, vector<2x32xf32>, vector<16x32xf32> -> vector<16x32xf32>
    %c0_6 = arith.constant 0 : index
    %c0_7 = arith.constant 0 : index
    %5 = vector.load %arg2[%c0_6, %c0_7] : memref<16x32xf32, #tpu.memory_space<vmem>>, vector<16x32xf32>
    %c32 = arith.constant 32 : index
    %c0_8 = arith.constant 0 : index
    %6 = vector.load %arg4[%c32, %c0_8] : memref<64x32xf32, #tpu.memory_space<vmem>>, vector<32x32xf32>
    %cst_9 = arith.constant dense<0.000000e+00> : vector<16x32xf32>
    %7 = tpu.matmul %5, %6, %cst_9 {dimension_numbers = #tpu.dot_dimension_numbers<[1], [0], [0], [1], [0, 0, 1, 1], [], []>} : vector<16x32xf32>, vector<32x32xf32>, vector<16x32xf32> -> vector<16x32xf32>
    %8 = arith.addf %7, %4 : vector<16x32xf32>
    %c0_10 = arith.constant 0 : index
    %c0_11 = arith.constant 0 : index
    %9 = vector.load %arg5[%c0_10, %c0_11] : memref<1x32xf32, #tpu.memory_space<vmem>>, vector<1x32xf32>
    %10 = vector.broadcast %9 : vector<1x32xf32> to vector<16x32xf32>
    %11 = arith.addf %8, %10 : vector<16x32xf32>
    %cst_12 = arith.constant 0.000000e+00 : f32
    %12 = vector.broadcast %cst_12 : f32 to vector<16x32xf32>
    %13 = arith.maximumf %11, %12 : vector<16x32xf32>
    %c0_13 = arith.constant 0 : index
    %c0_14 = arith.constant 0 : index
    %14 = vector.load %arg6[%c0_13, %c0_14] : memref<32x1xf32, #tpu.memory_space<vmem>>, vector<32x1xf32>
    %cst_15 = arith.constant dense<0.000000e+00> : vector<16x1xf32>
    %15 = tpu.matmul %13, %14, %cst_15 {dimension_numbers = #tpu.dot_dimension_numbers<[1], [0], [0], [1], [0, 0, 1, 1], [], []>} : vector<16x32xf32>, vector<32x1xf32>, vector<16x1xf32> -> vector<16x1xf32>
    %c0_16 = arith.constant 0 : index
    %c0_17 = arith.constant 0 : index
    %16 = vector.load %arg9[%c0_16, %c0_17] : memref<2x16xf32, #tpu.memory_space<vmem>>, vector<2x16xf32>
    %c0_18 = arith.constant 0 : index
    %c0_19 = arith.constant 0 : index
    %17 = vector.load %arg8[%c0_18, %c0_19] : memref<16x8xf32, #tpu.memory_space<vmem>>, vector<16x8xf32>
    %18 = vector.broadcast %15 : vector<16x1xf32> to vector<16x8xf32>
    %19 = arith.mulf %18, %17 : vector<16x8xf32>
    %cst_20 = arith.constant dense<0.000000e+00> : vector<2x8xf32>
    %20 = tpu.matmul %16, %19, %cst_20 {dimension_numbers = #tpu.dot_dimension_numbers<[1], [0], [0], [1], [0, 0, 1, 1], [], []>} : vector<2x16xf32>, vector<16x8xf32>, vector<2x8xf32> -> vector<2x8xf32>
    %c0_21 = arith.constant 0 : index
    %c0_22 = arith.constant 0 : index
    %21 = vector.load %arg3[%c0_21, %c0_22] : memref<2x8xi32, #tpu.memory_space<vmem>>, vector<2x8xi32>
    %c0_i32 = arith.constant 0 : i32
    %22 = vector.broadcast %c0_i32 : i32 to vector<2x8xi32>
    %23 = arith.cmpi ne, %21, %22 : vector<2x8xi32>
    %cst_23 = arith.constant 0xFF800000 : f32
    %24 = vector.broadcast %cst_23 : f32 to vector<2x8xf32>
    %25 = arith.select %23, %20, %24 : vector<2x8xi1>, vector<2x8xf32>
    %cst_24 = arith.constant dense<0xFF800000> : vector<2xf32>
    %26 = vector.multi_reduction <maximumf>, %25, %cst_24 [1] : vector<2x8xf32> to vector<2xf32>
    %27 = vector.shape_cast %26 : vector<2xf32> to vector<2x1xf32>
    %28 = vector.broadcast %27 : vector<2x1xf32> to vector<2x8xf32>
    %29 = arith.subf %25, %28 : vector<2x8xf32>
    %30 = math.exp %29 : vector<2x8xf32>
    %cst_25 = arith.constant dense<0.000000e+00> : vector<2xf32>
    %31 = vector.multi_reduction <add>, %30, %cst_25 [1] : vector<2x8xf32> to vector<2xf32>
    %32 = vector.shape_cast %31 : vector<2xf32> to vector<2x1xf32>
    %33 = tpu.reciprocal %32 : vector<2x1xf32> -> vector<2x1xf32>
    %34 = vector.broadcast %33 : vector<2x1xf32> to vector<2x8xf32>
    %35 = arith.mulf %30, %34 : vector<2x8xf32>
    %c0_26 = arith.constant 0 : index
    %c0_27 = arith.constant 0 : index
    %36 = vector.load %arg10[%c0_26, %c0_27] : memref<2x8xf32, #tpu.memory_space<vmem>>, vector<2x8xf32>
    tpu.vector_store %arg10[%c0_26, %c0_27], %35 {strides = array<i32>} : memref<2x8xf32, #tpu.memory_space<vmem>>, vector<2x8xf32>,
    return
  }
  func.func @transform_0(%arg0: i32) -> (i32, i32) {
    %c0_i32 = arith.constant 0 : i32
    %c0_i32_0 = arith.constant 0 : i32
    %c0_i32_1 = arith.constant 0 : i32
    return %c0_i32, %c0_i32_0 : i32, i32
  }
  func.func @transform_1(%arg0: i32) -> (i32, i32) {
    %c0_i32 = arith.constant 0 : i32
    %c0_i32_0 = arith.constant 0 : i32
    %c0_i32_1 = arith.constant 0 : i32
    return %c0_i32, %c0_i32_0 : i32, i32
  }
  func.func @transform_2(%arg0: i32) -> (i32, i32) {
    %c0_i32 = arith.constant 0 : i32
    %c0_i32_0 = arith.constant 0 : i32
    %c0_i32_1 = arith.constant 0 : i32
    return %c0_i32, %c0_i32_0 : i32, i32
  }
  func.func @transform_3(%arg0: i32) -> (i32, i32) {
    %c0_i32 = arith.constant 0 : i32
    %c0_i32_0 = arith.constant 0 : i32
    %c0_i32_1 = arith.constant 0 : i32
    return %c0_i32, %c0_i32_0 : i32, i32
  }
  func.func @transform_4(%arg0: i32) -> (i32, i32) {
    %c0_i32 = arith.constant 0 : i32
    %c0_i32_0 = arith.constant 0 : i32
    %c0_i32_1 = arith.constant 0 : i32
    return %c0_i32, %c0_i32_0 : i32, i32
  }
  func.func @transform_5(%arg0: i32) -> (i32, i32) {
    %c0_i32 = arith.constant 0 : i32
    %c0_i32_0 = arith.constant 0 : i32
    %c0_i32_1 = arith.constant 0 : i32
    return %c0_i32, %c0_i32_0 : i32, i32
  }
  func.func @transform_6(%arg0: i32) -> (i32, i32) {
    %c0_i32 = arith.constant 0 : i32
    %c0_i32_0 = arith.constant 0 : i32
    %c0_i32_1 = arith.constant 0 : i32
    return %c0_i32, %c0_i32_0 : i32, i32
  }
  func.func @transform_7(%arg0: i32) -> (i32, i32) {
    %c0_i32 = arith.constant 0 : i32
    %c0_i32_0 = arith.constant 0 : i32
    %c0_i32_1 = arith.constant 0 : i32
    return %c0_i32, %c0_i32_0 : i32, i32
  }
  func.func @transform_8(%arg0: i32) -> (i32, i32) {
    %c0_i32 = arith.constant 0 : i32
    %c0_i32_0 = arith.constant 0 : i32
    %c0_i32_1 = arith.constant 0 : i32
    return %c0_i32, %c0_i32_0 : i32, i32
  }
  func.func @transform_9(%arg0: i32) -> (i32, i32) {
    %c0_i32 = arith.constant 0 : i32
    %c0_i32_0 = arith.constant 0 : i32
    %c0_i32_1 = arith.constant 0 : i32
    return %c0_i32, %c0_i32_0 : i32, i32
  }
}

</mosaic_0001>

<bundles_post_ra>
// kernel: attention_forward.1
= control target key start
LH: loop header
LB: loop body
LE: loop exit
PB: predicated region body
PF: predicated region fallthrough
CT: control target
= control target key end

     0   :  { %v641_v3 = vmov 0.0|0.0   ;;  %vm642_vm0 = vmmov 0   ;;  %v643_v6 = vmov 0.0   ;;  %s786_s0 = inlined_call_operand.vmem [shape: f32[2,32], index: 0, kind: input, shape index: {}]   ;;  %s787_s1 = inlined_call_operand.vmem [shape: f32[16,32], index: 1, kind: input, shape index: {}]   ;;  %s788_s2 = inlined_call_operand.vmem [shape: s32[2,8], index: 2, kind: input, shape index: {}]   ;;  %s789_s3 = inlined_call_operand.vmem [shape: f32[64,32], index: 3, kind: input, shape index: {}]   ;;  %s790_s4 = inlined_call_operand.vmem [shape: f32[1,32], index: 4, kind: input, shape index: {}]   ;;  %s791_s5 = inlined_call_operand.vmem [shape: f32[32,1], index: 5, kind: input, shape index: {}]   ;;  %s792_s6 = inlined_call_operand.vmem [shape: f32[16,2], index: 6, kind: input, shape index: {}]   ;;  %s793_s7 = inlined_call_operand.vmem [shape: f32[16,8], index: 7, kind: input, shape index: {}]   ;;  %s794_s8 = inlined_call_operand.vmem [shape: f32[2,16], index: 8, kind: input, shape index: {}]   ;;  %s795_s9 = inlined_call_operand.hbm [shape: f32[2,8], index: 9, kind: output, shape index: {}]  }
   0x1   :  { %v34_v0 = vld [vmem:[%s789_s3] sm:$0xff]  ;;  %v35_v1 = vld [vmem:[%s789_s3 + $0x8] sm:$0xff]  ;;  %v36_v2 = vld [vmem:[%s789_s3 + $0x10] sm:$0xff]  ;;  %580 = vmatprep.subr.bf16.mxu0 %v641_v3  ;;  %543 = vmatprep.mubr.msk.f32.mxu0 %vm642_vm0, %v643_v6 }
   0x2   :  { %v581_v4 = vpack.c.bf16 %v35_v1, %v34_v0  ;;  %v37_v5 = vld [vmem:[%s789_s3 + $0x18] sm:$0xff] }
   0x3   :  { %14 = vsyncpa [#allocation3], 0  ;;  %v584_v7 = vpack.c.bf16 %v37_v5, %v36_v2  ;;  %v33_v8 = vld [vmem:[%s786_s0] sm:$0x3]  ;;  %vm38_vm1 = vcmask 261120   ;;  %vm114_vm2 = vcmask 15360  }
   0x4   :  { %582 = vmatpush3.bf16.msra.mxu0 %v581_v4  ;;  %v112_v9 = vld [vmem:[%s792_s6] sm:$0xff]  ;;  %v299_v11 = vld [vmem:[%s791_s5 + $0x8] sm:$0xff]  ;;  %vm121_vm3 = vcmask 1041408   ;;  %v204_v15 = vld [vmem:[%s789_s3 + $0x30] sm:$0xff]  ;;  %v644_v34 = vmov 0   ;;  %vm398_vm4 = vcmask 130048  }
   0x5   :  { %583 = vmatprep.subr.bf16.mxu0 %v641_v3  ;;  %548 = vmatprep.mubr.msk.f32.mxu1 %vm114_vm2, %v112_v9  ;;  %v298_v10 = vld [vmem:[%s791_s5] sm:$0xff]  ;;  %v203_v14 = vld [vmem:[%s789_s3 + $0x28] sm:$0xff]  ;;  %v205_v16 = vld [vmem:[%s789_s3 + $0x38] sm:$0xff]  ;;  %vm475_vm6 = vcmask 58368  }
   0x6   :  { %v594_v12 = vpack.c.bf16 %v299_v11, %v298_v10  ;;  %v202_v13 = vld [vmem:[%s789_s3 + $0x20] sm:$0xff]  ;;  %v113_v19 = vld [vmem:[%s792_s6 + $0x8] sm:$0xff]  ;;  %v590_v21 = vpack.c.bf16 %v205_v16, %v204_v15  ;;  %v300_v24 = vld [vmem:[%s791_s5 + $0x10] sm:$0xff]  ;;  %612 = vset.pattern.permute.xlu0 %v644_v34 }
   0x7   :  { %v586_v17 = vpack.c.bf16 %v203_v14, %v202_v13  ;;  %v200_v22 = vld [vmem:[%s787_s1] sm:$0xff]  ;;  %v201_v23 = vld [vmem:[%s787_s1 + $0x8] sm:$0xff]  ;;  %v301_v25 = vld [vmem:[%s791_s5 + $0x18] sm:$0xff] }
   0x8   :  { %585 = vmatpush3.bf16.msra.mxu0 %v584_v7  ;;  %v598_v26 = vpack.c.bf16 %v301_v25, %v300_v24  ;;  %v508_v27 = vld [vmem:[%s790_s4] ss:$0 sm:$0xff]  ;;  %v385_v39 = vld [vmem:[%s793_s7 + $0x8] sm:$0xff] }
   0x9   :  { %595 = vmatprep.subr.bf16.mxu0 %v594_v12  ;;  %v384_v38 = vld [vmem:[%s793_s7] sm:$0xff]  ;;  %s645_s7 = smov [#allocation2]  }
   0xa   :  { %v383_v44 = vld [vmem:[%s794_s8] sm:$0x3] }
   0xb   :  { %544 = vmatmul.mubr.msk.f32.vlgmr.msra.gmra.mrb[0].mxu0 %vm38_vm1, %v33_v8  ;;  %v472_v45 = vld [vmem:[%s788_s2] sm:$0x3]  ;;  %s494_s2 = sshll.u32 %s645_s7, 4  ;;  %s495_s2 = int_to_ptr.vmem [resolvable:$true] %s494_s2 }
   0xc   :  { %597 = vmatpush3.bf16.msra.mxu0 %v594_v12  ;;  %vm473_vm5 = vcmp.ne.s32.totalorder %v472_v45, 0  ;;  %s617_s8 = scalar_lea.vmem %s495_s2, 32  ;;  %p622_p1 = scmp.lt.s32.totalorder %s495_s2, %s495_s2 }
   0xd   :  { %599 = vmatprep.subr.bf16.mxu0 %v598_v26  ;;  %p618_p0 = scmp.ne.s32.totalorder %s495_s2, %s617_s8  ;;  %p623_p2 = scmp.lt.s32.totalorder %s617_s8, %s617_s8 }
   0xf   :  { %p624_p3 = por %p623_p2, %p622_p1 }
  0x10   :  { %601 = vmatpush3.bf16.msra.mxu0 %v598_v26 }
  0x11   :  { %p625_p4 = pnand %p624_p3, %p618_p0 }
  0xde   :  { %v108_v18 = vpop.f32.mrb[0].mxu0 }
  0xdf   :  { %v545_v20 = vpop.f32.mrb[1].mxu0  ;;  %546 = vmatprep.subr.msk.mxu1 %vm121_vm3, %v108_v18 }
  0xe0   :  { %547 = vmatpush3.msk.msra.mxu1 %vm121_vm3, %v108_v18 }
  0xe1   :  { %549 = vmatmul.mubr.msk.f32.vlgmr.msra.gmra.mrb[0].mxu1 %vm114_vm2, %v113_v19  ;;  %587 = vmatprep.subr.bf16.mxu1 %v586_v17 }
  0xe2   :  { %589 = vmatpush3.bf16.msra.mxu1 %v586_v17  ;;  %559 = vmatprep.mubr.msk.f32.mxu1 %vm38_vm1, %v200_v22 }
  0xe3   :  { %591 = vmatprep.subr.bf16.mxu1 %v590_v21 }
  0xe6   :  { %593 = vmatpush3.bf16.msra.mxu1 %v590_v21 }
  0xe7   :  { %602 = vmatprep.subr.bf16.mxu1 %v641_v3 }
  0xe9   :  { %560 = vmatmul.mubr.msk.f32.vlgmr.msra.gmra.mrb[0].mxu1 %vm38_vm1, %v201_v23 }
  0xea   :  { %577 = vmatprep.mubr.msk.f32.mxu1 %vm642_vm0, %v643_v6 }
 0x1bc   :  { %v561_v28 = vpop.f32.mrb[0].mxu1 }
 0x1bd   :  { %v295_v29 = vadd.f32 %v561_v28, %v508_v27  ;;  %v278_v30 = vpop.f32.mrb[1].mxu1 }
 0x1be   :  { %v294_v31 = vadd.f32 %v508_v27, %v278_v30 }
 0x1bf   :  { %v297_v33 = vmax.f32 %v295_v29, 0.0 }
 0x1c0   :  { %v296_v32 = vmax.f32 %v294_v31, 0.0 }
 0x1c2   :  { %570 = vmatprep.mubr.msk.f32.mxu0 %vm38_vm1, %v296_v32 }
 0x1c3   :  { %571 = vmatmul.mubr.msk.f32.vlgmr.msra.gmra.mrb[2].mxu0 %vm38_vm1, %v297_v33 }
 0x296   :  { %v572_v35 = vpop.f32.mrb[2].mxu0 }
 0x297   :  { %v374_v36 = vpop.f32.mrb[3].mxu0 }
 0x298   :  { %388 = vperm.xlu0 %612, %v374_v36  }
 0x29c   :  { %393 = vperm.xlu0 %612, %v572_v35  }
 0x317   :  { %v389_v37 = vpop.permute.xlu0 %388 }
 0x318   :  { %v396_v41 = vmul.f32 %v389_v37, %v384_v38 }
 0x31b   :  { %v394_v40 = vpop.permute.xlu0 %393 }
 0x31c   :  { %v397_v42 = vmul.f32 %v394_v40, %v385_v39 }
 0x31e   :  { %v603_v43 = vpack.c.bf16 %v397_v42, %v396_v41 }
 0x320   :  { %604 = vmatpush3.bf16.msra.mxu1 %v603_v43 }
 0x323   :  { %578 = vmatmul.mubr.msk.f32.vlgmr.msra.gmra.mrb[2].mxu1 %vm398_vm4, %v383_v44 }
 0x3f6   :  { %v468_v46 = vpop.f32.mrb[2].mxu1 }
 0x3f7   :  { %v474_v47 = vsel %vm473_vm5, %v468_v46, -inf  ;;  %v579_v48 = vpop.f32.mrb[3].mxu1 }
 0x3f8   :  { %v476_v49 = vsel %vm475_vm6, %v474_v47, -inf }
 0x3f9   :  { %477 = vmax.xlane.f32.xlu1 %v476_v49 }
 0x486   :  { %v478_v50 = vpop.xlane.xlu1 %477 }
 0x487   :  { %v479_v51 = vsub.f32 %v474_v47, %v478_v50 }
 0x489   :  { %v480_v52 = vmul.f32 1.442695, %v479_v51 }
 0x48b   :  { %613 = vpow2.f32 %v480_v52 }
 0x495   :  { %v614_v53 = vpop.eup %613 }
 0x496   :  { %v482_v54 = vsel %vm475_vm6, %v614_v53, 0.0 }
 0x497   :  { %483 = vadd.xlane.f32.xlu1 %v482_v54 }
 0x524   :  { %v484_v55 = vpop.xlane.xlu1 %483 }
 0x525   :  { %615 = vrcp.f32 %v484_v55 }
 0x52f   :  { %v616_v56 = vpop.eup %615 }
 0x530   :  { %v486_v57 = vmul.f32 %v616_v56, %v614_v53 }
 0x532   :  { %487 = vst.msk [vmem:[#allocation2] sm:$0x3] %vm475_vm6, %v486_v57 }
 0x533   :  { %628 = shalt.err (!%p625_p4)
}
 0x534   :  { %s629_s27 = scalar_lea.hbm %s795_s9, 32 }
 0x535   :  { %p630_p5 = scmp.ne.s32.totalorder %s795_s9, %s629_s27  ;;  %p633_p6 = scmp.lt.u32.totalorder %s629_s27, %s795_s9 }
 0x537   :  { %p635_p7 = pnand %p633_p6, %p630_p5 }
 0x539   :  { %638 = shalt.err (!%p635_p7)
}
 0x53a   :  { %497 = dma.vmem_to_hbm [thread:$0]  %s495_s2, 32, %s795_s9, [#allocation3]  }
 0x53b   :  { %639 = dma.done.wait [#allocation3], 32  }
 0x53c   :  { %640 = vsyncadd [#allocation3], 4294967264 }
 0x53d   :  { %501 = vsyncpa [#allocation3], 1 }

</bundles_post_ra>
